<compile_context>
chip_gen: v7x
topology: tpu7x:2x2x1
jax: 0.10.0
libtpu: 0.0.40
codegen_flags: <defaults>
</compile_context>

<pallas_src>
import jax
import jax.numpy as jnp
import numpy as np
from jax.experimental import pallas as pl
from jax.experimental.pallas import tpu as pltpu


_BLOCK_BUDGET_BYTES = 16 << 20   # double-buffered (in + out) blocks per grid step
_VMEM_LIMIT_BYTES = 32 << 20     # scoped VMEM; safe on v5e/v6e (128 MiB) and v7x (64 MiB)


def _phase_kernel(w_ref, x_ref, o_ref):
    """w_ref: (phases, 4) f32 in SMEM  -- 2x2 conv weights, index [p, kh*2+kw].
    x_ref:  (4, rt, L) f32             -- the four 2x2-patch planes, lane-dense.
    o_ref:  (phases, rt, L) f32        -- conv output, already in the final
                                          (phases, N*Ho*Wo) flat order."""
    phases = o_ref.shape[0]
    for p in range(phases):              # static unroll: 4 VPU FMAs per phase
        # Plane reads are inlined (review #3): no block-sized temporaries live
        # across the unrolled loop, so big tiles don't spill the vreg file.
        o_ref[p] = (w_ref[p, 0] * x_ref[0] + w_ref[p, 1] * x_ref[1]
                    + w_ref[p, 2] * x_ref[2] + w_ref[p, 3] * x_ref[3])


def _choose_lane_width(total, max_lanes=1024):
    """Largest divisor of `total` that is <= max_lanes and a multiple of 128
    (preferred) or of 8 (fallback).  Returns 0 if none exists (caller pads)."""
    top = min(max_lanes, total)
    for step in (128, 8):
        start = top - top % step
        for lanes in range(start, 127, -step):
            if total % lanes == 0:
                return lanes
    return 0


def _choose_row_tile(n_rows, lane_width, phases):
    """Rows of the flat (R, L) view per grid step: as large as the block budget
    allows (amortizes the ~0.35us/step overhead), a multiple of 8 sublanes, and
    preferring an even step count so the 'parallel' axis splits evenly across
    v7x's two TensorCores."""
    bytes_per_row = 2 * (4 + phases) * lane_width * 4     # in + out, double-buffered
    cap = max(1, _BLOCK_BUDGET_BYTES // bytes_per_row)
    if n_rows <= cap:
        return n_rows                                     # whole problem in one step
    min_steps = pl.cdiv(n_rows, cap)
    for steps in range(min_steps, min_steps + 8):
        if steps % 2:                                     # prefer even step counts
            continue
        rt = min(pl.cdiv(pl.cdiv(n_rows, steps), 8) * 8, n_rows)
        if rt <= cap:
            return rt
    return max(8, (cap // 8) * 8)


@jax.jit
def phase_forward(x, weight):
    """x: (N, 1, H, W) float; weight: (phases, 1, 2, 2) float.
    Returns (1, phases, N, H//2, W//2) float32, matching the PyTorch module."""
    N, C, H, W = x.shape
    assert C == 1, "phase module expects a single input channel"
    assert H % 2 == 0 and W % 2 == 0, "kernel=2 / stride=2 conv needs even H, W"
    phases = weight.shape[0]
    Ho, Wo = H // 2, W // 2
    total = N * Ho * Wo                                   # elements per phase/plane

    # --- glue (one fused XLA strided copy): 2x2 space-to-depth --------------
    # (N,1,H,W) -> (N,Ho,2,Wo,2) -> (kh,kw,N,Ho,Wo) -> (4, N*Ho*Wo)
    # Kept in XLA (see header); everything downstream is reshape-only.
    xs = (x.reshape(N, Ho, 2, Wo, 2)
           .transpose(2, 4, 0, 1, 3)
           .reshape(4, total)
           .astype(jnp.float32))

    # --- lane-dense flattening (review #1): (4, total) -> (4, R, L) ---------
    L = _choose_lane_width(total)
    if L == 0:                                            # awkward sizes: pad the tail
        L = 512 if total >= 512 else 128
        R = pl.cdiv(total, L)
        xs = jnp.pad(xs, ((0, 0), (0, R * L - total)))
    else:
        R = total // L
    xs = xs.reshape(4, R, L)

    w4 = weight.reshape(phases, 4).astype(jnp.float32)    # [p, kh*2+kw], SMEM scalars

    rt = _choose_row_tile(R, L, phases)
    grid = (pl.cdiv(R, rt),)                              # cdiv grid: masked tail,
                                                          # no divisibility required

    # --- hot path: lane-dense FMA kernel, output already in final layout ----
    out = pl.pallas_call(
        _phase_kernel,
        out_shape=jax.ShapeDtypeStruct((phases, R, L), jnp.float32),
        grid=grid,
        in_specs=[
            pl.BlockSpec(memory_space=pltpu.MemorySpace.SMEM),  # 2x2 weights
            pl.BlockSpec((4, rt, L), lambda i: (0, i, 0)),      # patch planes
        ],
        out_specs=pl.BlockSpec((phases, rt, L), lambda i: (0, i, 0)),
        compiler_params=pltpu.CompilerParams(
            dimension_semantics=("parallel",),
            vmem_limit_bytes=_VMEM_LIMIT_BYTES),
    )(w4, xs)

    # --- free (contiguous) reshapes to the exact PyTorch output layout ------
    out = out.reshape(phases, R * L)
    if R * L != total:
        out = out[:, :total]
    return out.reshape(phases, N, Ho, Wo)[None]


if __name__ == "__main__":
    key = jax.random.PRNGKey(0)
    kx, kw = jax.random.split(key)

    size = 2                       # module constructor argument
    phases = size * size
    N, H, W = 2, 16, 16

    x = jax.random.normal(kx, (N, 1, H, W), dtype=jnp.float32)

    # nn.Conv2d default init: U(-b, b) with b = 1/sqrt(fan_in) = 1/sqrt(1*2*2).
    bound = 1.0 / np.sqrt(1 * 2 * 2)
    weight = jax.random.uniform(kw, (phases, 1, 2, 2), dtype=jnp.float32,
                                minval=-bound, maxval=bound)

    out = jax.block_until_ready(phase_forward(x, weight))
    assert out.shape == (1, phases, N, H // 2, W // 2), out.shape

    # Exact float64 reference for the 2x2 / stride-2 conv + permute.
    xn = np.asarray(x, dtype=np.float64)[:, 0]
    wn = np.asarray(weight, dtype=np.float64).reshape(phases, 4)
    a = xn[:, 0::2, 0::2]
    b = xn[:, 0::2, 1::2]
    c = xn[:, 1::2, 0::2]
    d = xn[:, 1::2, 1::2]
    ref = np.stack([wn[p, 0] * a + wn[p, 1] * b + wn[p, 2] * c + wn[p, 3] * d
                    for p in range(phases)])[None]

    np.testing.assert_allclose(np.asarray(out, dtype=np.float64), ref,
                               rtol=1e-5, atol=1e-5)
    print("KERNEL_OK")
</pallas_src>

<mosaic_0001>
module attributes {stable_mosaic.version = 11 : i64} {
  func.func @_phase_kernel(%arg0: i32, %arg1: memref<4x4xf32, #tpu.memory_space<smem>>, %arg2: memref<4x1x128xf32, #tpu.memory_space<vmem>>, %arg3: memref<4x1x128xf32, #tpu.memory_space<vmem>>) attributes {dimension_semantics = [#tpu.dimension_semantics<parallel>], iteration_bounds = array<i64: 1>, scalar_prefetch = 0 : i64, scratch_operands = 0 : i64, tpu.core_type = #tpu.core_type<tc>, window_params = [{transform_indices = @transform_0, window_bounds = array<i64: 4, 4>}, {transform_indices = @transform_1, window_bounds = array<i64: 4, 1, 128>}, {transform_indices = @transform_2, window_bounds = array<i64: 4, 1, 128>}]} {
    %c0 = arith.constant 0 : index
    %c0_0 = arith.constant 0 : index
    %0 = memref.load %arg1[%c0, %c0_0] : memref<4x4xf32, #tpu.memory_space<smem>>
    %c0_1 = arith.constant 0 : index
    %c0_2 = arith.constant 0 : index
    %c0_3 = arith.constant 0 : index
    %1 = vector.load %arg2[%c0_1, %c0_2, %c0_3] : memref<4x1x128xf32, #tpu.memory_space<vmem>>, vector<1x1x128xf32>
    %2 = vector.shape_cast %1 : vector<1x1x128xf32> to vector<1x128xf32>
    %3 = vector.broadcast %0 : f32 to vector<1x128xf32>
    %4 = arith.mulf %3, %2 : vector<1x128xf32>
    %c0_4 = arith.constant 0 : index
    %c1 = arith.constant 1 : index
    %5 = memref.load %arg1[%c0_4, %c1] : memref<4x4xf32, #tpu.memory_space<smem>>
    %c1_5 = arith.constant 1 : index
    %c0_6 = arith.constant 0 : index
    %c0_7 = arith.constant 0 : index
    %6 = vector.load %arg2[%c1_5, %c0_6, %c0_7] : memref<4x1x128xf32, #tpu.memory_space<vmem>>, vector<1x1x128xf32>
    %7 = vector.shape_cast %6 : vector<1x1x128xf32> to vector<1x128xf32>
    %8 = vector.broadcast %5 : f32 to vector<1x128xf32>
    %9 = arith.mulf %8, %7 : vector<1x128xf32>
    %10 = arith.addf %4, %9 : vector<1x128xf32>
    %c0_8 = arith.constant 0 : index
    %c2 = arith.constant 2 : index
    %11 = memref.load %arg1[%c0_8, %c2] : memref<4x4xf32, #tpu.memory_space<smem>>
    %c2_9 = arith.constant 2 : index
    %c0_10 = arith.constant 0 : index
    %c0_11 = arith.constant 0 : index
    %12 = vector.load %arg2[%c2_9, %c0_10, %c0_11] : memref<4x1x128xf32, #tpu.memory_space<vmem>>, vector<1x1x128xf32>
    %13 = vector.shape_cast %12 : vector<1x1x128xf32> to vector<1x128xf32>
    %14 = vector.broadcast %11 : f32 to vector<1x128xf32>
    %15 = arith.mulf %14, %13 : vector<1x128xf32>
    %16 = arith.addf %10, %15 : vector<1x128xf32>
    %c0_12 = arith.constant 0 : index
    %c3 = arith.constant 3 : index
    %17 = memref.load %arg1[%c0_12, %c3] : memref<4x4xf32, #tpu.memory_space<smem>>
    %c3_13 = arith.constant 3 : index
    %c0_14 = arith.constant 0 : index
    %c0_15 = arith.constant 0 : index
    %18 = vector.load %arg2[%c3_13, %c0_14, %c0_15] : memref<4x1x128xf32, #tpu.memory_space<vmem>>, vector<1x1x128xf32>
    %19 = vector.shape_cast %18 : vector<1x1x128xf32> to vector<1x128xf32>
    %20 = vector.broadcast %17 : f32 to vector<1x128xf32>
    %21 = arith.mulf %20, %19 : vector<1x128xf32>
    %22 = arith.addf %16, %21 : vector<1x128xf32>
    %c0_16 = arith.constant 0 : index
    %c0_17 = arith.constant 0 : index
    %c0_18 = arith.constant 0 : index
    %23 = vector.load %arg3[%c0_16, %c0_17, %c0_18] : memref<4x1x128xf32, #tpu.memory_space<vmem>>, vector<1x1x128xf32>
    %24 = vector.shape_cast %23 : vector<1x1x128xf32> to vector<1x128xf32>
    %25 = vector.shape_cast %22 : vector<1x128xf32> to vector<1x1x128xf32>
    tpu.vector_store %arg3[%c0_16, %c0_17, %c0_18], %25 {strides = array<i32>} : memref<4x1x128xf32, #tpu.memory_space<vmem>>, vector<1x1x128xf32>,
    %c1_19 = arith.constant 1 : index
    %c0_20 = arith.constant 0 : index
    %26 = memref.load %arg1[%c1_19, %c0_20] : memref<4x4xf32, #tpu.memory_space<smem>>
    %c0_21 = arith.constant 0 : index
    %c0_22 = arith.constant 0 : index
    %c0_23 = arith.constant 0 : index
    %27 = vector.load %arg2[%c0_21, %c0_22, %c0_23] : memref<4x1x128xf32, #tpu.memory_space<vmem>>, vector<1x1x128xf32>
    %28 = vector.shape_cast %27 : vector<1x1x128xf32> to vector<1x128xf32>
    %29 = vector.broadcast %26 : f32 to vector<1x128xf32>
    %30 = arith.mulf %29, %28 : vector<1x128xf32>
    %c1_24 = arith.constant 1 : index
    %c1_25 = arith.constant 1 : index
    %31 = memref.load %arg1[%c1_24, %c1_25] : memref<4x4xf32, #tpu.memory_space<smem>>
    %c1_26 = arith.constant 1 : index
    %c0_27 = arith.constant 0 : index
    %c0_28 = arith.constant 0 : index
    %32 = vector.load %arg2[%c1_26, %c0_27, %c0_28] : memref<4x1x128xf32, #tpu.memory_space<vmem>>, vector<1x1x128xf32>
    %33 = vector.shape_cast %32 : vector<1x1x128xf32> to vector<1x128xf32>
    %34 = vector.broadcast %31 : f32 to vector<1x128xf32>
    %35 = arith.mulf %34, %33 : vector<1x128xf32>
    %36 = arith.addf %30, %35 : vector<1x128xf32>
    %c1_29 = arith.constant 1 : index
    %c2_30 = arith.constant 2 : index
    %37 = memref.load %arg1[%c1_29, %c2_30] : memref<4x4xf32, #tpu.memory_space<smem>>
    %c2_31 = arith.constant 2 : index
    %c0_32 = arith.constant 0 : index
    %c0_33 = arith.constant 0 : index
    %38 = vector.load %arg2[%c2_31, %c0_32, %c0_33] : memref<4x1x128xf32, #tpu.memory_space<vmem>>, vector<1x1x128xf32>
    %39 = vector.shape_cast %38 : vector<1x1x128xf32> to vector<1x128xf32>
    %40 = vector.broadcast %37 : f32 to vector<1x128xf32>
    %41 = arith.mulf %40, %39 : vector<1x128xf32>
    %42 = arith.addf %36, %41 : vector<1x128xf32>
    %c1_34 = arith.constant 1 : index
    %c3_35 = arith.constant 3 : index
    %43 = memref.load %arg1[%c1_34, %c3_35] : memref<4x4xf32, #tpu.memory_space<smem>>
    %c3_36 = arith.constant 3 : index
    %c0_37 = arith.constant 0 : index
    %c0_38 = arith.constant 0 : index
    %44 = vector.load %arg2[%c3_36, %c0_37, %c0_38] : memref<4x1x128xf32, #tpu.memory_space<vmem>>, vector<1x1x128xf32>
    %45 = vector.shape_cast %44 : vector<1x1x128xf32> to vector<1x128xf32>
    %46 = vector.broadcast %43 : f32 to vector<1x128xf32>
    %47 = arith.mulf %46, %45 : vector<1x128xf32>
    %48 = arith.addf %42, %47 : vector<1x128xf32>
    %c1_39 = arith.constant 1 : index
    %c0_40 = arith.constant 0 : index
    %c0_41 = arith.constant 0 : index
    %49 = vector.load %arg3[%c1_39, %c0_40, %c0_41] : memref<4x1x128xf32, #tpu.memory_space<vmem>>, vector<1x1x128xf32>
    %50 = vector.shape_cast %49 : vector<1x1x128xf32> to vector<1x128xf32>
    %51 = vector.shape_cast %48 : vector<1x128xf32> to vector<1x1x128xf32>
    tpu.vector_store %arg3[%c1_39, %c0_40, %c0_41], %51 {strides = array<i32>} : memref<4x1x128xf32, #tpu.memory_space<vmem>>, vector<1x1x128xf32>,
    %c2_42 = arith.constant 2 : index
    %c0_43 = arith.constant 0 : index
    %52 = memref.load %arg1[%c2_42, %c0_43] : memref<4x4xf32, #tpu.memory_space<smem>>
    %c0_44 = arith.constant 0 : index
    %c0_45 = arith.constant 0 : index
    %c0_46 = arith.constant 0 : index
    %53 = vector.load %arg2[%c0_44, %c0_45, %c0_46] : memref<4x1x128xf32, #tpu.memory_space<vmem>>, vector<1x1x128xf32>
    %54 = vector.shape_cast %53 : vector<1x1x128xf32> to vector<1x128xf32>
    %55 = vector.broadcast %52 : f32 to vector<1x128xf32>
    %56 = arith.mulf %55, %54 : vector<1x128xf32>
    %c2_47 = arith.constant 2 : index
    %c1_48 = arith.constant 1 : index
    %57 = memref.load %arg1[%c2_47, %c1_48] : memref<4x4xf32, #tpu.memory_space<smem>>
    %c1_49 = arith.constant 1 : index
    %c0_50 = arith.constant 0 : index
    %c0_51 = arith.constant 0 : index
    %58 = vector.load %arg2[%c1_49, %c0_50, %c0_51] : memref<4x1x128xf32, #tpu.memory_space<vmem>>, vector<1x1x128xf32>
    %59 = vector.shape_cast %58 : vector<1x1x128xf32> to vector<1x128xf32>
    %60 = vector.broadcast %57 : f32 to vector<1x128xf32>
    %61 = arith.mulf %60, %59 : vector<1x128xf32>
    %62 = arith.addf %56, %61 : vector<1x128xf32>
    %c2_52 = arith.constant 2 : index
    %c2_53 = arith.constant 2 : index
    %63 = memref.load %arg1[%c2_52, %c2_53] : memref<4x4xf32, #tpu.memory_space<smem>>
    %c2_54 = arith.constant 2 : index
    %c0_55 = arith.constant 0 : index
    %c0_56 = arith.constant 0 : index
    %64 = vector.load %arg2[%c2_54, %c0_55, %c0_56] : memref<4x1x128xf32, #tpu.memory_space<vmem>>, vector<1x1x128xf32>
    %65 = vector.shape_cast %64 : vector<1x1x128xf32> to vector<1x128xf32>
    %66 = vector.broadcast %63 : f32 to vector<1x128xf32>
    %67 = arith.mulf %66, %65 : vector<1x128xf32>
    %68 = arith.addf %62, %67 : vector<1x128xf32>
    %c2_57 = arith.constant 2 : index
    %c3_58 = arith.constant 3 : index
    %69 = memref.load %arg1[%c2_57, %c3_58] : memref<4x4xf32, #tpu.memory_space<smem>>
    %c3_59 = arith.constant 3 : index
    %c0_60 = arith.constant 0 : index
    %c0_61 = arith.constant 0 : index
    %70 = vector.load %arg2[%c3_59, %c0_60, %c0_61] : memref<4x1x128xf32, #tpu.memory_space<vmem>>, vector<1x1x128xf32>
    %71 = vector.shape_cast %70 : vector<1x1x128xf32> to vector<1x128xf32>
    %72 = vector.broadcast %69 : f32 to vector<1x128xf32>
    %73 = arith.mulf %72, %71 : vector<1x128xf32>
    %74 = arith.addf %68, %73 : vector<1x128xf32>
    %c2_62 = arith.constant 2 : index
    %c0_63 = arith.constant 0 : index
    %c0_64 = arith.constant 0 : index
    %75 = vector.load %arg3[%c2_62, %c0_63, %c0_64] : memref<4x1x128xf32, #tpu.memory_space<vmem>>, vector<1x1x128xf32>
    %76 = vector.shape_cast %75 : vector<1x1x128xf32> to vector<1x128xf32>
    %77 = vector.shape_cast %74 : vector<1x128xf32> to vector<1x1x128xf32>
    tpu.vector_store %arg3[%c2_62, %c0_63, %c0_64], %77 {strides = array<i32>} : memref<4x1x128xf32, #tpu.memory_space<vmem>>, vector<1x1x128xf32>,
    %c3_65 = arith.constant 3 : index
    %c0_66 = arith.constant 0 : index
    %78 = memref.load %arg1[%c3_65, %c0_66] : memref<4x4xf32, #tpu.memory_space<smem>>
    %c0_67 = arith.constant 0 : index
    %c0_68 = arith.constant 0 : index
    %c0_69 = arith.constant 0 : index
    %79 = vector.load %arg2[%c0_67, %c0_68, %c0_69] : memref<4x1x128xf32, #tpu.memory_space<vmem>>, vector<1x1x128xf32>
    %80 = vector.shape_cast %79 : vector<1x1x128xf32> to vector<1x128xf32>
    %81 = vector.broadcast %78 : f32 to vector<1x128xf32>
    %82 = arith.mulf %81, %80 : vector<1x128xf32>
    %c3_70 = arith.constant 3 : index
    %c1_71 = arith.constant 1 : index
    %83 = memref.load %arg1[%c3_70, %c1_71] : memref<4x4xf32, #tpu.memory_space<smem>>
    %c1_72 = arith.constant 1 : index
    %c0_73 = arith.constant 0 : index
    %c0_74 = arith.constant 0 : index
    %84 = vector.load %arg2[%c1_72, %c0_73, %c0_74] : memref<4x1x128xf32, #tpu.memory_space<vmem>>, vector<1x1x128xf32>
    %85 = vector.shape_cast %84 : vector<1x1x128xf32> to vector<1x128xf32>
    %86 = vector.broadcast %83 : f32 to vector<1x128xf32>
    %87 = arith.mulf %86, %85 : vector<1x128xf32>
    %88 = arith.addf %82, %87 : vector<1x128xf32>
    %c3_75 = arith.constant 3 : index
    %c2_76 = arith.constant 2 : index
    %89 = memref.load %arg1[%c3_75, %c2_76] : memref<4x4xf32, #tpu.memory_space<smem>>
    %c2_77 = arith.constant 2 : index
    %c0_78 = arith.constant 0 : index
    %c0_79 = arith.constant 0 : index
    %90 = vector.load %arg2[%c2_77, %c0_78, %c0_79] : memref<4x1x128xf32, #tpu.memory_space<vmem>>, vector<1x1x128xf32>
    %91 = vector.shape_cast %90 : vector<1x1x128xf32> to vector<1x128xf32>
    %92 = vector.broadcast %89 : f32 to vector<1x128xf32>
    %93 = arith.mulf %92, %91 : vector<1x128xf32>
    %94 = arith.addf %88, %93 : vector<1x128xf32>
    %c3_80 = arith.constant 3 : index
    %c3_81 = arith.constant 3 : index
    %95 = memref.load %arg1[%c3_80, %c3_81] : memref<4x4xf32, #tpu.memory_space<smem>>
    %c3_82 = arith.constant 3 : index
    %c0_83 = arith.constant 0 : index
    %c0_84 = arith.constant 0 : index
    %96 = vector.load %arg2[%c3_82, %c0_83, %c0_84] : memref<4x1x128xf32, #tpu.memory_space<vmem>>, vector<1x1x128xf32>
    %97 = vector.shape_cast %96 : vector<1x1x128xf32> to vector<1x128xf32>
    %98 = vector.broadcast %95 : f32 to vector<1x128xf32>
    %99 = arith.mulf %98, %97 : vector<1x128xf32>
    %100 = arith.addf %94, %99 : vector<1x128xf32>
    %c3_85 = arith.constant 3 : index
    %c0_86 = arith.constant 0 : index
    %c0_87 = arith.constant 0 : index
    %101 = vector.load %arg3[%c3_85, %c0_86, %c0_87] : memref<4x1x128xf32, #tpu.memory_space<vmem>>, vector<1x1x128xf32>
    %102 = vector.shape_cast %101 : vector<1x1x128xf32> to vector<1x128xf32>
    %103 = vector.shape_cast %100 : vector<1x128xf32> to vector<1x1x128xf32>
    tpu.vector_store %arg3[%c3_85, %c0_86, %c0_87], %103 {strides = array<i32>} : memref<4x1x128xf32, #tpu.memory_space<vmem>>, vector<1x1x128xf32>,
    return
  }
  func.func @transform_0(%arg0: i32) -> (i32, i32) {
    %c0_i32 = arith.constant 0 : i32
    %c0_i32_0 = arith.constant 0 : i32
    %c0_i32_1 = arith.constant 0 : i32
    return %c0_i32, %c0_i32_0 : i32, i32
  }
  func.func @transform_1(%arg0: i32) -> (i32, i32, i32) {
    %c0_i32 = arith.constant 0 : i32
    %c0_i32_0 = arith.constant 0 : i32
    %c0_i32_1 = arith.constant 0 : i32
    return %c0_i32, %arg0, %c0_i32_0 : i32, i32, i32
  }
  func.func @transform_2(%arg0: i32) -> (i32, i32, i32) {
    %c0_i32 = arith.constant 0 : i32
    %c0_i32_0 = arith.constant 0 : i32
    %c0_i32_1 = arith.constant 0 : i32
    return %c0_i32, %arg0, %c0_i32_0 : i32, i32, i32
  }
}

</mosaic_0001>

<bundles_post_ra>
// kernel: phase_forward.1
= control target key start
LH: loop header
LB: loop body
LE: loop exit
PB: predicated region body
PF: predicated region fallthrough
CT: control target
= control target key end

     0   :  { %7 = vsyncpa [#allocation3], 0  ;;  %s269_s0 = inlined_call_operand.vmem [shape: f32[4,4], index: 0, kind: input, shape index: {}]   ;;  %s270_s1 = inlined_call_operand.vmem [shape: f32[4,1,128], index: 1, kind: input, shape index: {}]   ;;  %s271_s2 = inlined_call_operand.vmem [shape: f32[4,1,128], index: 2, kind: output, shape index: {}]  }
   0x1   :  { %s14_s11 = sshll.u32 %s269_s0, 4  ;;  %s15_s11 = int_to_ptr.vmem [resolvable:$true] %s14_s11 }
   0x2   :  { %s146_s12 = scalar_lea.vmem %s15_s11, 64  ;;  %p151_p1 = scmp.lt.s32.totalorder %s15_s11, %s15_s11 }
   0x3   :  { %p147_p0 = scmp.ne.s32.totalorder %s15_s11, %s146_s12  ;;  %p152_p2 = scmp.lt.s32.totalorder %s146_s12, %s146_s12 }
   0x5   :  { %p153_p3 = por %p152_p2, %p151_p1 }
   0x7   :  { %p154_p4 = pnand %p153_p3, %p147_p0 }
   0x9   :  { %157 = shalt.err (!%p154_p4)
}
   0xa   :  { %s160_s13 = smov [#allocation2]  }
   0xb   :  { %17 = dma.vmem_to_smem %s15_s11, 64, %s160_s13, [#allocation3]  }
   0xc   :  { %158 = dma.done.wait [#allocation3], 64  }
   0xd   :  { %159 = vsyncadd [#allocation3], 4294967232 }
   0xe   :  { %23 = sfence }
   0xf   :  { %s24_s14 = sld [smem:[#allocation2]]  ;;  %s115_s15 = sld [smem:[#allocation2 + $0x1]]  ;;  %v25_v0 = vld [vmem:[%s270_s1] sm:$0x1]  ;;  %v116_v1 = vld [vmem:[%s270_s1 + $0x1] sm:$0x1] }
  0x10   :  { %s117_s16 = sld [smem:[#allocation2 + $0x2]]  ;;  %s119_s17 = sld [smem:[#allocation2 + $0x3]]  ;;  %v118_v2 = vld [vmem:[%s270_s1 + $0x2] sm:$0x1]  ;;  %v120_v3 = vld [vmem:[%s270_s1 + $0x3] sm:$0x1] }
  0x11   :  { %s121_s18 = sld [smem:[#allocation2 + $0x80]]  ;;  %s122_s20 = sld [smem:[#allocation2 + $0x81]]  ;;  %v48_v6 = vld [vmem:[%s270_s1] sm:$0x1]  ;;  %v123_v10 = vld [vmem:[%s270_s1 + $0x1] sm:$0x1] }
  0x12   :  { %s185_s23 = sld [smem:[#allocation2 + $0x82]]  ;;  %s187_s24 = sld [smem:[#allocation2 + $0x83]]  ;;  %v125_v11 = vld [vmem:[%s270_s1 + $0x2] sm:$0x1]  ;;  %v127_v15 = vld [vmem:[%s270_s1 + $0x3] sm:$0x1] }
  0x13   :  { %s195_s29 = sld [smem:[#allocation2 + $0x100]]  ;;  %s200_s4 = sld [smem:[#allocation2 + $0x101]]  ;;  %v69_v20 = vld [vmem:[%s270_s1] sm:$0x1]  ;;  %v131_v24 = vld [vmem:[%s270_s1 + $0x1] sm:$0x1] }
  0x14   :  { %s202_s5 = sld [smem:[#allocation2 + $0x102]]  ;;  %s210_s10 = sld [smem:[#allocation2 + $0x103]]  ;;  %v133_v25 = vld [vmem:[%s270_s1 + $0x2] sm:$0x1]  ;;  %v135_v30 = vld [vmem:[%s270_s1 + $0x3] sm:$0x1] }
  0x15   :  { %v26_v4 = vstv %s24_s14  ;;  %v31_v5 = vstv %s115_s15  ;;  %s215_s13 = sld [smem:[#allocation2 + $0x180]]  ;;  %s217_s14 = sld [smem:[#allocation2 + $0x181]]  ;;  %v90_v35 = vld [vmem:[%s270_s1] sm:$0x1]  ;;  %v139_v36 = vld [vmem:[%s270_s1 + $0x1] sm:$0x1] }
  0x16   :  { %v27_v7 = vmul.f32 %v26_v4, %v25_v0  ;;  %v32_v8 = vmul.f32 %v116_v1, %v31_v5  ;;  %v37_v9 = vstv %s117_s16  ;;  %v43_v13 = vstv %s119_s17  ;;  %s222_s17 = sld [smem:[#allocation2 + $0x182]]  ;;  %v141_v41 = vld [vmem:[%s270_s1 + $0x2] sm:$0x1]  ;;  %v143_v46 = vld [vmem:[%s270_s1 + $0x3] sm:$0x1] }
  0x17   :  { %v38_v12 = vmul.f32 %v118_v2, %v37_v9  ;;  %v49_v14 = vstv %s121_s18  ;;  %v44_v17 = vmul.f32 %v120_v3, %v43_v13  ;;  %v53_v19 = vstv %s122_s20  ;;  %s232_s20 = sld [smem:[#allocation2 + $0x183]] }
  0x18   :  { %v33_v16 = vadd.f32 %v32_v8, %v27_v7  ;;  %v50_v18 = vmul.f32 %v49_v14, %v48_v6  ;;  %v54_v21 = vmul.f32 %v123_v10, %v53_v19  ;;  %v58_v22 = vstv %s185_s23 }
  0x19   :  { %v63_v23 = vstv %s187_s24  ;;  %v59_v27 = vmul.f32 %v125_v11, %v58_v22  ;;  %v70_v29 = vstv %s195_s29  ;;  %v74_v33 = vstv %s200_s4 }
  0x1a   :  { %v39_v26 = vadd.f32 %v38_v12, %v33_v16  ;;  %v64_v28 = vmul.f32 %v127_v15, %v63_v23  ;;  %v55_v31 = vadd.f32 %v54_v21, %v50_v18  ;;  %v71_v32 = vmul.f32 %v70_v29, %v69_v20 }
  0x1b   :  { %v79_v34 = vstv %s202_s5  ;;  %v75_v38 = vmul.f32 %v131_v24, %v74_v33  ;;  %v84_v40 = vstv %s210_s10  ;;  %v91_v44 = vstv %s215_s13 }
  0x1c   :  { %v45_v37 = vadd.f32 %v44_v17, %v39_v26  ;;  %v80_v39 = vmul.f32 %v133_v25, %v79_v34  ;;  %v60_v42 = vadd.f32 %v59_v27, %v55_v31  ;;  %v85_v43 = vmul.f32 %v135_v30, %v84_v40 }
  0x1d   :  { %v95_v45 = vstv %s217_s14  ;;  %v76_v47 = vadd.f32 %v75_v38, %v71_v32  ;;  %v92_v48 = vmul.f32 %v91_v44, %v90_v35  ;;  %v100_v50 = vstv %s222_s17 }
  0x1e   :  { %46 = vst [vmem:[%s271_s2] sm:$0x1] %v45_v37  ;;  %v96_v49 = vmul.f32 %v139_v36, %v95_v45  ;;  %v65_v51 = vadd.f32 %v64_v28, %v60_v42  ;;  %v101_v52 = vmul.f32 %v141_v41, %v100_v50  ;;  %v105_v53 = vstv %s232_s20 }
  0x1f   :  { %v81_v54 = vadd.f32 %v80_v39, %v76_v47  ;;  %v106_v56 = vmul.f32 %v143_v46, %v105_v53 }
  0x20   :  { %v97_v55 = vadd.f32 %v96_v49, %v92_v48  ;;  %128 = vst [vmem:[%s271_s2 + $0x1] sm:$0x1] %v65_v51 }
  0x21   :  { %v86_v57 = vadd.f32 %v85_v43, %v81_v54 }
  0x22   :  { %v102_v58 = vadd.f32 %v101_v52, %v97_v55 }
  0x23   :  { %136 = vst [vmem:[%s271_s2 + $0x2] sm:$0x1] %v86_v57 }
  0x24   :  { %v107_v59 = vadd.f32 %v106_v56, %v102_v58 }
  0x26   :  { %144 = vst [vmem:[%s271_s2 + $0x3] sm:$0x1] %v107_v59 }
  0x27   :  { %114 = vsyncpa [#allocation3], 1 }

</bundles_post_ra>
